<compile_context>
chip_gen: v6e
topology: v6e:2x2x1
jax: 0.10.0
libtpu: 0.0.40
codegen_flags: <defaults>
</compile_context>

<pallas_src>
import functools

import jax
import jax.numpy as jnp
from jax.experimental import pallas as pl
from jax.experimental.pallas import tpu as pltpu

_LANE = 128


def _default_num_shards():
    """2 shards on v7x (2 TensorCores/chip), 1 on single-TC v5e/v6e."""
    try:
        kind = jax.devices()[0].device_kind.lower()
    except Exception:
        return 1
    return 2 if ("v7" in kind or "7x" in kind) else 1


def _mse_partial_kernel(pred_ref, targ_ref, out_ref, acc_ref, *,
                        valid_rows, acc_rows):
    """Per-shard partial sum of (pred - target)^2 over lane-dense row blocks."""
    s = pl.program_id(0)          # shard index        (parallel axis)
    i = pl.program_id(1)          # row-block in shard (arbitrary/reduction axis)
    n_inner = pl.num_programs(1)

    @pl.when(i == 0)
    def _():
        acc_ref[...] = jnp.zeros_like(acc_ref)

    block_rows = pred_ref.shape[0]
    n_chunks = block_rows // acc_rows          # wrapper guarantees divisibility

    # Logical (unclamped) row offset of this tile.  Edge blocks read past the
    # logical array (Pallas leaves the OOB region as uninitialized VMEM); the
    # masked path below selects exactly 0.0 for those rows so garbage (even
    # NaN/Inf) cannot leak into the accumulator.
    row0 = (s * n_inner + i) * block_rows
    block_is_full = (row0 + block_rows) <= valid_rows

    @pl.when(block_is_full)
    def _():
        # Hot path: no iota / compare / select — pure load, sub, fma.
        for c in range(n_chunks):
            sl = pl.ds(c * acc_rows, acc_rows)
            d = (pred_ref[sl, :].astype(jnp.float32)
                 - targ_ref[sl, :].astype(jnp.float32))
            acc_ref[...] += d * d

    @pl.when(jnp.logical_not(block_is_full))
    def _():
        # Ragged last block (or a clamped duplicate block): mask by logical
        # row index so invalid rows contribute exactly 0.
        for c in range(n_chunks):
            sl = pl.ds(c * acc_rows, acc_rows)
            d = (pred_ref[sl, :].astype(jnp.float32)
                 - targ_ref[sl, :].astype(jnp.float32))
            row_ids = (row0 + c * acc_rows
                       + jax.lax.broadcasted_iota(jnp.int32, (acc_rows, _LANE), 0))
            acc_ref[...] += jnp.where(row_ids < valid_rows, d * d, 0.0)

    @pl.when(i == n_inner - 1)
    def _():
        # Single cross-sublane reduce per shard; 128 lane-partials go out.
        out_ref[...] = acc_ref[...].sum(axis=0, keepdims=True).reshape(1, 1, _LANE)


def multiplied_mse_loss(pred, target, multiplier, *, block_rows=None,
                        acc_rows=2048, num_shards=None):
    """JAX wrapper mirroring MultipliedLoss(MSELoss(), multiplier)(pred, target)."""
    assert pred.shape == target.shape, "pred/target must match"
    total = int(pred.size)
    p_flat = pred.reshape(-1)
    t_flat = target.reshape(-1)

    # Ragged (<128 element) tail is handled outside the kernel.
    # TODO(synk): when total % 128 != 0 the [:main] slice below makes XLA
    # materialize a sliced HBM copy of both inputs; the zero-copy fast path
    # requires total % 128 == 0 (always true for typical NCHW shapes).
    main = (total // _LANE) * _LANE
    if main < total:
        td = p_flat[main:].astype(jnp.float32) - t_flat[main:].astype(jnp.float32)
        tail_sum = jnp.sum(td * td)
    else:
        tail_sum = jnp.float32(0.0)

    # Works for both Python constants (the torch MultipliedLoss case) and
    # traced JAX scalars; applied exactly once.
    scale = jnp.asarray(multiplier, jnp.float32) / jnp.float32(total)
    if main == 0:
        return tail_sum * scale

    rows = main // _LANE
    itemsize = jnp.dtype(pred.dtype).itemsize

    if block_rows is None:
        # ~4 MiB lane-dense tiles regardless of dtype; 2 inputs x 2 pipeline
        # buffers x 4 MiB + 1 MiB fixed accumulator ~= 17 MiB (< 32 MiB scoped
        # VMEM on v5e/v6e/v7x alike).
        block_rows = 8192 if itemsize >= 4 else 16384

    if num_shards is None:
        num_shards = _default_num_shards()

    if rows <= block_rows:
        block_rows = rows                      # full-dim block (always legal)

    num_blocks = -(-rows // block_rows)
    num_shards = max(1, min(num_shards, num_blocks))

    if num_shards > 1 and num_blocks % num_shards:
        # Make the shard split exact so the index_map clamp never produces a
        # duplicate block (a redundant multi-MiB HBM read + fully-masked pass
        # on one of v7x's two TensorCores).
        nb_target = -(-num_blocks // num_shards) * num_shards
        block_rows = max(8, ((-(-rows // nb_target) + 7) // 8) * 8)
        num_blocks = -(-rows // block_rows)
        # In the rare case this still doesn't divide evenly, the clamp+mask
        # fallback below remains correct (one small duplicated block).

    bps = -(-num_blocks // num_shards)         # row-blocks per shard

    # Fixed-size accumulator, decoupled from the (larger) input tile.
    if acc_rows >= block_rows or block_rows % acc_rows:
        acc_rows = block_rows

    # Free (bitcast) reshape when main == total (no padding, no copy).
    p2 = p_flat[:main].reshape(rows, _LANE)
    t2 = t_flat[:main].reshape(rows, _LANE)

    def in_map(s, i):
        # Clamp so the DMA never starts fully past the array; duplicated /
        # ragged rows are masked in-kernel by logical row index.
        return (jnp.minimum(s * bps + i, num_blocks - 1), 0)

    kernel = functools.partial(_mse_partial_kernel,
                               valid_rows=rows, acc_rows=acc_rows)

    cost = pl.CostEstimate(
        flops=3 * main,                                   # sub, mul, add per elem
        transcendentals=0,
        bytes_accessed=main * 2 * itemsize + num_shards * _LANE * 4,
    )

    partials = pl.pallas_call(
        kernel,
        out_shape=jax.ShapeDtypeStruct((num_shards, 1, _LANE), jnp.float32),
        grid_spec=pltpu.PrefetchScalarGridSpec(
            num_scalar_prefetch=0,
            grid=(num_shards, bps),
            in_specs=[
                pl.BlockSpec((block_rows, _LANE), in_map),
                pl.BlockSpec((block_rows, _LANE), in_map),
            ],
            out_specs=pl.BlockSpec((1, 1, _LANE), lambda s, i: (s, 0, 0)),
            scratch_shapes=[pltpu.VMEM((acc_rows, _LANE), jnp.float32)],
        ),
        compiler_params=pltpu.CompilerParams(
            dimension_semantics=("parallel", "arbitrary"),
            # ~17 MiB footprint; 32 MiB is safe on every generation including
            # v7x's 64 MiB physical / 32 MiB default-scoped VMEM.
            vmem_limit_bytes=32 * 1024 * 1024,
        ),
        cost_estimate=cost,
    )(p2, t2)

    # MultipliedLoss.forward: multiplier * mean((pred - target)^2)
    return (jnp.sum(partials) + tail_sum) * scale


def reference_multiplied_mse(pred, target, multiplier):
    d = pred.astype(jnp.float32) - target.astype(jnp.float32)
    return multiplier * jnp.mean(d * d)


if __name__ == "__main__":
    key = jax.random.PRNGKey(0)
    k1, k2 = jax.random.split(key)
    # Small NCHW shapes consistent with a segmentation-loss use case.
    pred = jax.random.normal(k1, (2, 4, 16, 16), dtype=jnp.float32)
    target = jax.random.normal(k2, (2, 4, 16, 16), dtype=jnp.float32)
    multiplier = 2.5   # MultipliedLoss.multiplier

    loss = multiplied_mse_loss(pred, target, multiplier)
    loss = jax.block_until_ready(loss)

    ref = reference_multiplied_mse(pred, target, multiplier)
    assert jnp.allclose(loss, ref, rtol=1e-5, atol=1e-5), (loss, ref)

    print("KERNEL_OK")
</pallas_src>

<mosaic_0001>
module attributes {stable_mosaic.version = 11 : i64} {
  func.func @_mse_partial_kernel(%arg0: i32, %arg1: i32, %arg2: memref<16x128xf32, #tpu.memory_space<vmem>>, %arg3: memref<16x128xf32, #tpu.memory_space<vmem>>, %arg4: memref<1x1x128xf32, #tpu.memory_space<vmem>>, %arg5: memref<16x128xf32, #tpu.memory_space<vmem>>) attributes {dimension_semantics = [#tpu.dimension_semantics<parallel>, #tpu.dimension_semantics<arbitrary>], iteration_bounds = array<i64: 1, 1>, scalar_prefetch = 0 : i64, scratch_operands = 1 : i64, tpu.core_type = #tpu.core_type<tc>, window_params = [{transform_indices = @transform_0, window_bounds = array<i64: 16, 128>}, {transform_indices = @transform_1, window_bounds = array<i64: 16, 128>}, {transform_indices = @transform_2, window_bounds = array<i64: 1, 1, 128>}]} {
    %c0_i32 = arith.constant 0 : i32
    %0 = arith.cmpi eq, %arg1, %c0_i32 : i32
    %1 = arith.extui %0 : i1 to i32
    %c0_i32_0 = arith.constant 0 : i32
    %2 = arith.cmpi ne, %1, %c0_i32_0 : i32
    scf.if %2 {
      %cst = arith.constant 0.000000e+00 : f32
      %16 = vector.broadcast %cst : f32 to vector<16x128xf32>
      %c0 = arith.constant 0 : index
      %c0_7 = arith.constant 0 : index
      %17 = vector.load %arg5[%c0, %c0_7] : memref<16x128xf32, #tpu.memory_space<vmem>>, vector<16x128xf32>
      tpu.vector_store %arg5[%c0, %c0_7], %16 {strides = array<i32>} : memref<16x128xf32, #tpu.memory_space<vmem>>, vector<16x128xf32>,
    } else {
    }
    %c1_i32 = arith.constant 1 : i32
    %3 = arith.muli %arg0, %c1_i32 : i32
    %4 = arith.addi %3, %arg1 : i32
    %c16_i32 = arith.constant 16 : i32
    %5 = arith.muli %4, %c16_i32 : i32
    %c16_i32_1 = arith.constant 16 : i32
    %6 = arith.addi %5, %c16_i32_1 : i32
    %c16_i32_2 = arith.constant 16 : i32
    %7 = arith.cmpi sle, %6, %c16_i32_2 : i32
    %8 = arith.extui %7 : i1 to i32
    %c0_i32_3 = arith.constant 0 : i32
    %9 = arith.cmpi ne, %8, %c0_i32_3 : i32
    scf.if %9 {
      %c0 = arith.constant 0 : index
      %c0_7 = arith.constant 0 : index
      %16 = vector.load %arg2[%c0, %c0_7] : memref<16x128xf32, #tpu.memory_space<vmem>>, vector<16x128xf32>
      %c0_8 = arith.constant 0 : index
      %c0_9 = arith.constant 0 : index
      %17 = vector.load %arg3[%c0_8, %c0_9] : memref<16x128xf32, #tpu.memory_space<vmem>>, vector<16x128xf32>
      %18 = arith.subf %16, %17 : vector<16x128xf32>
      %c0_10 = arith.constant 0 : index
      %c0_11 = arith.constant 0 : index
      %19 = vector.load %arg5[%c0_10, %c0_11] : memref<16x128xf32, #tpu.memory_space<vmem>>, vector<16x128xf32>
      %20 = arith.mulf %18, %18 : vector<16x128xf32>
      %21 = arith.addf %19, %20 : vector<16x128xf32>
      %c0_12 = arith.constant 0 : index
      %c0_13 = arith.constant 0 : index
      %22 = vector.load %arg5[%c0_12, %c0_13] : memref<16x128xf32, #tpu.memory_space<vmem>>, vector<16x128xf32>
      tpu.vector_store %arg5[%c0_12, %c0_13], %21 {strides = array<i32>} : memref<16x128xf32, #tpu.memory_space<vmem>>, vector<16x128xf32>,
    } else {
    }
    %true = arith.constant true
    %10 = arith.xori %7, %true : i1
    %11 = arith.extui %10 : i1 to i32
    %c0_i32_4 = arith.constant 0 : i32
    %12 = arith.cmpi ne, %11, %c0_i32_4 : i32
    scf.if %12 {
      %c0 = arith.constant 0 : index
      %c0_7 = arith.constant 0 : index
      %16 = vector.load %arg2[%c0, %c0_7] : memref<16x128xf32, #tpu.memory_space<vmem>>, vector<16x128xf32>
      %c0_8 = arith.constant 0 : index
      %c0_9 = arith.constant 0 : index
      %17 = vector.load %arg3[%c0_8, %c0_9] : memref<16x128xf32, #tpu.memory_space<vmem>>, vector<16x128xf32>
      %18 = arith.subf %16, %17 : vector<16x128xf32>
      %c0_i32_10 = arith.constant 0 : i32
      %19 = arith.addi %5, %c0_i32_10 : i32
      %20 = tpu.iota {dimensions = array<i32: 0>} : vector<16x128xi32>
      %21 = vector.broadcast %19 : i32 to vector<16x128xi32>
      %22 = arith.addi %21, %20 : vector<16x128xi32>
      %c0_11 = arith.constant 0 : index
      %c0_12 = arith.constant 0 : index
      %23 = vector.load %arg5[%c0_11, %c0_12] : memref<16x128xf32, #tpu.memory_space<vmem>>, vector<16x128xf32>
      %c16_i32_13 = arith.constant 16 : i32
      %24 = vector.broadcast %c16_i32_13 : i32 to vector<16x128xi32>
      %25 = arith.cmpi slt, %22, %24 : vector<16x128xi32>
      %26 = arith.mulf %18, %18 : vector<16x128xf32>
      %cst = arith.constant 0.000000e+00 : f32
      %27 = vector.broadcast %cst : f32 to vector<16x128xf32>
      %28 = arith.select %25, %26, %27 : vector<16x128xi1>, vector<16x128xf32>
      %29 = arith.addf %23, %28 : vector<16x128xf32>
      %c0_14 = arith.constant 0 : index
      %c0_15 = arith.constant 0 : index
      %30 = vector.load %arg5[%c0_14, %c0_15] : memref<16x128xf32, #tpu.memory_space<vmem>>, vector<16x128xf32>
      tpu.vector_store %arg5[%c0_14, %c0_15], %29 {strides = array<i32>} : memref<16x128xf32, #tpu.memory_space<vmem>>, vector<16x128xf32>,
    } else {
    }
    %c0_i32_5 = arith.constant 0 : i32
    %13 = arith.cmpi eq, %arg1, %c0_i32_5 : i32
    %14 = arith.extui %13 : i1 to i32
    %c0_i32_6 = arith.constant 0 : i32
    %15 = arith.cmpi ne, %14, %c0_i32_6 : i32
    scf.if %15 {
      %c0 = arith.constant 0 : index
      %c0_7 = arith.constant 0 : index
      %16 = vector.load %arg5[%c0, %c0_7] : memref<16x128xf32, #tpu.memory_space<vmem>>, vector<16x128xf32>
      %cst = arith.constant dense<0.000000e+00> : vector<128xf32>
      %17 = vector.multi_reduction <add>, %16, %cst [0] : vector<16x128xf32> to vector<128xf32>
      %18 = vector.shape_cast %17 : vector<128xf32> to vector<1x128xf32>
      %19 = vector.shape_cast %18 : vector<1x128xf32> to vector<1x1x128xf32>
      %c0_8 = arith.constant 0 : index
      %c0_9 = arith.constant 0 : index
      %c0_10 = arith.constant 0 : index
      %20 = vector.load %arg4[%c0_8, %c0_9, %c0_10] : memref<1x1x128xf32, #tpu.memory_space<vmem>>, vector<1x1x128xf32>
      tpu.vector_store %arg4[%c0_8, %c0_9, %c0_10], %19 {strides = array<i32>} : memref<1x1x128xf32, #tpu.memory_space<vmem>>, vector<1x1x128xf32>,
    } else {
    }
    return
  }
  func.func @transform_0(%arg0: i32, %arg1: i32) -> (i32, i32) {
    %c1_i32 = arith.constant 1 : i32
    %0 = arith.muli %arg0, %c1_i32 : i32
    %1 = arith.addi %0, %arg1 : i32
    %c0_i32 = arith.constant 0 : i32
    %2 = arith.minsi %1, %c0_i32 : i32
    %c0_i32_0 = arith.constant 0 : i32
    %c0_i32_1 = arith.constant 0 : i32
    return %2, %c0_i32_0 : i32, i32
  }
  func.func @transform_1(%arg0: i32, %arg1: i32) -> (i32, i32) {
    %c1_i32 = arith.constant 1 : i32
    %0 = arith.muli %arg0, %c1_i32 : i32
    %1 = arith.addi %0, %arg1 : i32
    %c0_i32 = arith.constant 0 : i32
    %2 = arith.minsi %1, %c0_i32 : i32
    %c0_i32_0 = arith.constant 0 : i32
    %c0_i32_1 = arith.constant 0 : i32
    return %2, %c0_i32_0 : i32, i32
  }
  func.func @transform_2(%arg0: i32, %arg1: i32) -> (i32, i32, i32) {
    %c0_i32 = arith.constant 0 : i32
    %c0_i32_0 = arith.constant 0 : i32
    %c0_i32_1 = arith.constant 0 : i32
    return %arg0, %c0_i32, %c0_i32_0 : i32, i32, i32
  }
}

</mosaic_0001>

<bundles_post_ra>
// kernel: tpu_custom_call.1
= control target key start
LH: loop header
LB: loop body
LE: loop exit
PB: predicated region body
PF: predicated region fallthrough
CT: control target
= control target key end

     0   :  { %7 = vsyncpa [#allocation4], 0  ;;  %s248_s0 = inlined_call_operand.hbm [shape: f32[16,128], index: 0, kind: input, shape index: {}]   ;;  %s249_s1 = inlined_call_operand.hbm [shape: f32[16,128], index: 1, kind: input, shape index: {}]   ;;  %s250_s2 = inlined_call_operand.hbm [shape: f32[1,1,128], index: 2, kind: output, shape index: {}]  }
   0x1   :  { %8 = vsyncpa [#allocation7], 0 }
   0x2   :  { %9 = vsyncpa [#allocation5], 0  ;;  %s219_s9 = smov [#allocation3]  }
   0x3   :  { %s21_s10 = sshll.u32 %s219_s9, 4  ;;  %s22_s10 = int_to_ptr.vmem [resolvable:$true] %s21_s10 }
   0x4   :  { %s161_s11 = scalar_lea.vmem %s22_s10, 256  ;;  %p166_p1 = scmp.lt.s32.totalorder %s22_s10, %s22_s10 }
   0x5   :  { %p162_p0 = scmp.ne.s32.totalorder %s22_s10, %s161_s11  ;;  %p167_p2 = scmp.lt.s32.totalorder %s161_s11, %s161_s11 }
   0x7   :  { %p168_p3 = por %p167_p2, %p166_p1 }
   0x9   :  { %p169_p4 = pnand %p168_p3, %p162_p0 }
   0xb   :  { %172 = shalt.err (!%p169_p4)
}
   0xc   :  { %s220_s12 = smov 128   ;;  %s221_s13 = smov 8  }
   0xd   :  { %27 = dma.hbm_to_vmem [thread:$0]  %s248_s0, 256, %s22_s10, [#allocation4], %s220_s12, %s220_s12, %s221_s13  }
   0xe   :  { %s222_s16 = smov [#allocation6]  }
   0xf   :  { %s39_s17 = sshll.u32 %s222_s16, 4  ;;  %s40_s17 = int_to_ptr.vmem [resolvable:$true] %s39_s17 }
  0x10   :  { %s181_s18 = scalar_lea.vmem %s40_s17, 256  ;;  %p186_p6 = scmp.lt.s32.totalorder %s40_s17, %s40_s17 }
  0x11   :  { %p182_p5 = scmp.ne.s32.totalorder %s40_s17, %s181_s18  ;;  %p187_p7 = scmp.lt.s32.totalorder %s181_s18, %s181_s18 }
  0x13   :  { %p188_p8 = por %p187_p7, %p186_p6 }
  0x15   :  { %p189_p9 = pnand %p188_p8, %p182_p5 }
  0x17   :  { %192 = shalt.err (!%p189_p9)
}
  0x18   :  { %45 = dma.hbm_to_vmem [thread:$0]  %s249_s1, 256, %s40_s17, [#allocation7], %s220_s12, %s220_s12, %s221_s13  }
  0x19   :  { %213 = dma.done.wait [#allocation4], 256  }
  0x1a   :  { %214 = vsyncadd [#allocation4], 4294967040 }
  0x1b   :  { %215 = dma.done.wait [#allocation7], 256  }
  0x1c   :  { %216 = vsyncadd [#allocation7], 4294967040  ;;  %v73_v0 = vld [vmem:[#allocation3] sm:$0xff]  ;;  %v74_v1 = vld [vmem:[#allocation3 + $0x8] sm:$0xff]  ;;  %s223_s0 = smov [#allocation8]  }
  0x1d   :  { %v75_v2 = vld [vmem:[#allocation6] sm:$0xff]  ;;  %v76_v3 = vld [vmem:[#allocation6 + $0x8] sm:$0xff]  ;;  %s134_s21 = sshll.u32 %s223_s0, 4  ;;  %s135_s21 = int_to_ptr.vmem [resolvable:$true] %s134_s21 }
  0x1e   :  { %v77_v4 = vsub.f32 %v73_v0, %v75_v2  ;;  %v78_v5 = vsub.f32 %v74_v1, %v76_v3  ;;  %s193_s1 = scalar_lea.vmem %s135_s21, 16  ;;  %s197_s22 = scalar_lea.vmem %s135_s21, 32 }
  0x1f   :  { %p194_p10 = scmp.ne.s32.totalorder %s135_s21, %s193_s1  ;;  %p198_p11 = scmp.lt.s32.totalorder %s135_s21, %s135_s21 }
  0x20   :  { %v81_v6 = vmul.f32 %v77_v4, %v77_v4  ;;  %v82_v7 = vmul.f32 %v78_v5, %v78_v5  ;;  %p199_p12 = scmp.lt.s32.totalorder %s197_s22, %s193_s1 }
  0x22   :  { %v120_v8 = vadd.f32 %v82_v7, %v81_v6  ;;  %p200_p13 = por %p199_p12, %p198_p11 }
  0x24   :  { %v121_v9 = vrot.slane %v120_v8, 4  ;;  %p201_p0 = pnand %p200_p13, %p194_p10 }
  0x26   :  { %v122_v10 = vadd.f32 %v121_v9, %v120_v8 }
  0x28   :  { %v123_v11 = vrot.slane %v122_v10, 2 }
  0x2a   :  { %v124_v12 = vadd.f32 %v123_v11, %v122_v10 }
  0x2c   :  { %v125_v13 = vrot.slane %v124_v12, 1 }
  0x2e   :  { %v126_v14 = vadd.f32 %v125_v13, %v124_v12 }
  0x30   :  { %127 = vst [vmem:[#allocation8] sm:$0x1] %v126_v14 }
  0x31   :  { %204 = shalt.err (!%p201_p0)
}
  0x32   :  { %137 = dma.vmem_to_hbm [thread:$0]  %s135_s21, 16, %s250_s2, [#allocation5]  }
  0x33   :  { %217 = dma.done.wait [#allocation5], 16  }
  0x34   :  { %218 = vsyncadd [#allocation5], 4294967280 }
  0x35   :  { %141 = vsyncpa [#allocation4], 1 }
  0x36   :  { %142 = vsyncpa [#allocation7], 1 }
  0x37   :  { %143 = vsyncpa [#allocation5], 1 }

</bundles_post_ra>
